<compile_context>
chip_gen: v7x
topology: tpu7x:2x2x1
jax: 0.10.0
libtpu: 0.0.40
codegen_flags: <defaults>
</compile_context>

<pallas_src>
import jax
import jax.numpy as jnp
import numpy as np
from jax.experimental import pallas as pl
from jax.experimental.pallas import tpu as pltpu


def _cdiv(a, b):
    return -(-a // b)


def _pick_batch_block(BT, N, L, itemsize, target_bytes=4 << 20, min_steps=4):
    """Batch rows per grid step.

    Uses the *padded* VMEM footprint (sublane/lane tiling) so a small L cannot
    silently blow the VMEM budget; independent of BT's divisors (the grid uses
    cdiv and a partial last block); prefers an even step count >= min_steps
    for pipelining and v7x megacore balance."""
    sub = 8 * max(1, 4 // itemsize)                  # f32: 8, bf16: 16, int8: 32
    n_pad = _cdiv(N, sub) * sub
    l_pad = _cdiv(L, 128) * 128
    per_b = max(1, n_pad * l_pad * itemsize)         # padded bytes per batch row
    bb = max(1, min(BT, target_bytes // per_b))      # biggest block under budget
    steps = _cdiv(BT, bb)
    if steps < min_steps and bb > 1:                 # plenty of headroom -> split
        bb = max(1, _cdiv(BT, min_steps))
        steps = _cdiv(BT, bb)
    if steps > 1 and steps % 2 == 1:                 # prefer an even step count
        bb_even = max(1, _cdiv(BT, steps + 1))
        if _cdiv(BT, bb_even) % 2 == 0:
            bb = bb_even
    return bb


def decoder_forward(x, weight, bias, kernel_size, out_dtype=jnp.float32):
    """x: [spk, B, N, L], weight: [N, 1, K], bias: [1] (torch ConvTranspose1d params).

    Compute dtype follows x.dtype: keep f32 unless x is already bf16 in HBM (a
    standalone wrapper cast would cost more HBM traffic than it saves)."""
    spk, B, N, L = x.shape
    K = kernel_size
    S = K // 2
    # TODO(synk): odd kernel_size (stride != K/2) would need a 3-way overlap-add;
    # Sandglasset uses even kernel sizes, so only that path is fused here.
    assert K == 2 * S, "fused overlap-add path requires even kernel_size"
    BT = spk * B

    xk = x.reshape(BT, N, L)                                    # native layout, no cast
    wT = jnp.transpose(weight[:, 0, :]).astype(x.dtype)         # (K, N), tiny
    b1 = bias.astype(jnp.float32)                               # (1,) scalar

    BB = _pick_batch_block(BT, N, L, jnp.dtype(x.dtype).itemsize)
    grid = (_cdiv(BT, BB),)

    def kernel(x_ref, w_ref, b_ref, o_ref):
        bias_v = b_ref[0]                                       # scalar from SMEM
        wb = jnp.broadcast_to(w_ref[...], (BB, K, N))           # tiny, once per step
        # Channel reduction for all BB batch rows in one batched MXU call,
        # f32 accumulation: (BB,K,N) @ (BB,N,L) -> (BB,K,L); frames on lanes.
        y = jnp.einsum("bkn,bnl->bkl", wb, x_ref[...],
                       preferred_element_type=jnp.float32)
        first = y[:, :S, :]                                     # taps 0..S-1  -> frame q
        second = y[:, S:, :]                                    # taps S..K-1  -> frame q+1
        zcol = jnp.zeros((BB, S, 1), jnp.float32)
        frames = (jnp.concatenate([first, zcol], axis=2)        # contributes q in [0, L)
                  + jnp.concatenate([zcol, second], axis=2)     # contributes q in [1, L]
                  + bias_v)
        o_ref[...] = frames.astype(o_ref.dtype)                 # one lane-dense store

    out_frames = pl.pallas_call(
        kernel,
        out_shape=jax.ShapeDtypeStruct((BT, S, L + 1), out_dtype),
        grid=grid,
        in_specs=[
            pl.BlockSpec((BB, N, L), lambda i: (i, 0, 0)),      # x block (~4 MiB padded)
            pl.BlockSpec((K, N), lambda i: (0, 0)),             # wT, grid-invariant
            pl.BlockSpec(memory_space=pltpu.MemorySpace.SMEM),  # bias scalar
        ],
        out_specs=pl.BlockSpec((BB, S, L + 1), lambda i: (i, 0, 0)),
        compiler_params=pltpu.CompilerParams(
            dimension_semantics=("parallel",),
            vmem_limit_bytes=32 * 1024 * 1024),
    )(xk, wT, b1)

    # Output-sized glue: interleave the S hop samples into the time axis.
    T_out = (L - 1) * S + K                                     # == (L+1)*S for even K
    out = jnp.transpose(out_frames, (0, 2, 1)).reshape(BT, (L + 1) * S)
    return out[:, :T_out].reshape(spk, B, 1, T_out)


def decoder_reference(x, weight, bias, kernel_size):
    """Pure-JAX scatter-add reference matching torch ConvTranspose1d semantics."""
    spk, B, N, L = x.shape
    K = kernel_size
    S = K // 2
    T = (L - 1) * S + K
    xb = x.reshape(spk * B, N, L)
    y = jnp.einsum("bcl,ck->blk", xb, weight[:, 0, :])           # (BT, L, K)
    idx = (jnp.arange(L)[:, None] * S + jnp.arange(K)[None, :]).reshape(-1)
    out = jnp.zeros((spk * B, T), jnp.float32)
    out = out.at[:, idx].add(y.reshape(spk * B, L * K)) + bias[0]
    return out.reshape(spk, B, 1, T)


if __name__ == "__main__":
    # small shapes consistent with the module: spk=2, B=8, N=32 channels, L=16 frames
    spk, B, N, L = 2, 8, 32, 16
    K = 4                                                        # kernel_size (stride = 2)

    key = jax.random.PRNGKey(0)
    kx, kw, kb, kx2 = jax.random.split(key, 4)
    x = jax.random.normal(kx, (spk, B, N, L), dtype=jnp.float32)
    weight = jax.random.normal(kw, (N, 1, K), dtype=jnp.float32) * 0.1
    bias = jax.random.normal(kb, (1,), dtype=jnp.float32) * 0.1

    T_out = (L - 1) * (K // 2) + K

    # f32 path, multi-step parallel grid (BT=16 -> BB=4, 4 steps) — strict check.
    ref = decoder_reference(x, weight, bias, K)
    out = jax.block_until_ready(decoder_forward(x, weight, bias, K))
    assert out.shape == (spk, B, 1, T_out), out.shape
    np.testing.assert_allclose(np.asarray(out), np.asarray(ref), rtol=1e-5, atol=1e-5)

    # bf16-input path (x already bf16 "upstream"), f32 accumulation in-kernel.
    out_bf16 = jax.block_until_ready(
        decoder_forward(x.astype(jnp.bfloat16), weight, bias, K))
    np.testing.assert_allclose(np.asarray(out_bf16), np.asarray(ref), rtol=5e-2, atol=5e-2)

    # uneven batch (BT=10 -> BB=3, cdiv grid of 4 with a partial last block):
    # exercises the divisor-independent blocking / dropped OOB writes path.
    B2 = 5
    x2 = jax.random.normal(kx2, (spk, B2, N, L), dtype=jnp.float32)
    ref2 = decoder_reference(x2, weight, bias, K)
    out2 = jax.block_until_ready(decoder_forward(x2, weight, bias, K))
    assert out2.shape == (spk, B2, 1, T_out), out2.shape
    np.testing.assert_allclose(np.asarray(out2), np.asarray(ref2), rtol=1e-5, atol=1e-5)

    print("KERNEL_OK")
</pallas_src>

<mosaic_0001>
module attributes {stable_mosaic.version = 11 : i64} {
  func.func @kernel(%arg0: i32, %arg1: memref<4x32x16xf32, #tpu.memory_space<vmem>>, %arg2: memref<4x32xf32, #tpu.memory_space<vmem>>, %arg3: memref<1xf32, #tpu.memory_space<smem>>, %arg4: memref<4x2x17xf32, #tpu.memory_space<vmem>>) attributes {dimension_semantics = [#tpu.dimension_semantics<parallel>], iteration_bounds = array<i64: 4>, scalar_prefetch = 0 : i64, scratch_operands = 0 : i64, tpu.core_type = #tpu.core_type<tc>, window_params = [{transform_indices = @transform_0, window_bounds = array<i64: 4, 32, 16>}, {pipeline_mode = #tpu.pipeline_mode<synchronous>, transform_indices = @transform_1, window_bounds = array<i64: 4, 32>}, {transform_indices = @transform_2, window_bounds = array<i64: 1>}, {transform_indices = @transform_3, window_bounds = array<i64: 4, 2, 17>}]} {
    %c0 = arith.constant 0 : index
    %0 = memref.load %arg3[%c0] : memref<1xf32, #tpu.memory_space<smem>>
    %c0_0 = arith.constant 0 : index
    %c0_1 = arith.constant 0 : index
    %1 = vector.load %arg2[%c0_0, %c0_1] : memref<4x32xf32, #tpu.memory_space<vmem>>, vector<4x32xf32>
    %2 = vector.shape_cast %1 : vector<4x32xf32> to vector<1x4x32xf32>
    %3 = vector.broadcast %2 : vector<1x4x32xf32> to vector<4x4x32xf32>
    %c0_2 = arith.constant 0 : index
    %c0_3 = arith.constant 0 : index
    %c0_4 = arith.constant 0 : index
    %4 = vector.load %arg1[%c0_2, %c0_3, %c0_4] : memref<4x32x16xf32, #tpu.memory_space<vmem>>, vector<4x32x16xf32>
    "tpu.trace_start"() <{level = 10 : i32, message = "bkn,bnl->bkl"}> : () -> ()
    %cst = arith.constant dense<0.000000e+00> : vector<4x4x16xf32>
    %5 = tpu.matmul %3, %4, %cst {dimension_numbers = #tpu.dot_dimension_numbers<[2], [1], [1], [2], [0, 0, 0, 1, 1, 2], [0], [0]>} : vector<4x4x32xf32>, vector<4x32x16xf32>, vector<4x4x16xf32> -> vector<4x4x16xf32>
    "tpu.trace_stop"() : () -> ()
    %6 = vector.extract_strided_slice %5 {offsets = [0, 0, 0], sizes = [4, 2, 16], strides = [1, 1, 1]} : vector<4x4x16xf32> to vector<4x2x16xf32>
    %7 = vector.extract_strided_slice %5 {offsets = [0, 2, 0], sizes = [4, 2, 16], strides = [1, 1, 1]} : vector<4x4x16xf32> to vector<4x2x16xf32>
    %cst_5 = arith.constant 0.000000e+00 : f32
    %8 = vector.broadcast %cst_5 : f32 to vector<4x2x1xf32>
    %9 = tpu.concatenate %6, %8 in 2 : vector<4x2x16xf32>, vector<4x2x1xf32> -> vector<4x2x17xf32>
    %10 = tpu.concatenate %8, %7 in 2 : vector<4x2x1xf32>, vector<4x2x16xf32> -> vector<4x2x17xf32>
    %11 = arith.addf %9, %10 : vector<4x2x17xf32>
    %12 = vector.broadcast %0 : f32 to vector<4x2x17xf32>
    %13 = arith.addf %11, %12 : vector<4x2x17xf32>
    %c0_6 = arith.constant 0 : index
    %c0_7 = arith.constant 0 : index
    %c0_8 = arith.constant 0 : index
    %14 = vector.load %arg4[%c0_6, %c0_7, %c0_8] : memref<4x2x17xf32, #tpu.memory_space<vmem>>, vector<4x2x17xf32>
    tpu.vector_store %arg4[%c0_6, %c0_7, %c0_8], %13 {strides = array<i32>} : memref<4x2x17xf32, #tpu.memory_space<vmem>>, vector<4x2x17xf32>,
    return
  }
  func.func @transform_0(%arg0: i32) -> (i32, i32, i32) {
    %c0_i32 = arith.constant 0 : i32
    %c0_i32_0 = arith.constant 0 : i32
    %c0_i32_1 = arith.constant 0 : i32
    return %arg0, %c0_i32, %c0_i32_0 : i32, i32, i32
  }
  func.func @transform_1(%arg0: i32) -> (i32, i32) {
    %c0_i32 = arith.constant 0 : i32
    %c0_i32_0 = arith.constant 0 : i32
    %c0_i32_1 = arith.constant 0 : i32
    return %c0_i32, %c0_i32_0 : i32, i32
  }
  func.func @transform_2(%arg0: i32) -> i32 {
    %c0_i32 = arith.constant 0 : i32
    %c0_i32_0 = arith.constant 0 : i32
    return %c0_i32 : i32
  }
  func.func @transform_3(%arg0: i32) -> (i32, i32, i32) {
    %c0_i32 = arith.constant 0 : i32
    %c0_i32_0 = arith.constant 0 : i32
    %c0_i32_1 = arith.constant 0 : i32
    return %arg0, %c0_i32, %c0_i32_0 : i32, i32, i32
  }
}

</mosaic_0001>

<bundles_post_ra>
// kernel: tpu_custom_call.1
= control target key start
LH: loop header
LB: loop body
LE: loop exit
PB: predicated region body
PF: predicated region fallthrough
CT: control target
= control target key end

     0   :  { %s991_s0 = inlined_call_operand.vmem [shape: f32[16,32,16], index: 0, kind: input, shape index: {}]   ;;  %s992_s1 = inlined_call_operand.vmem [shape: f32[4,32], index: 1, kind: input, shape index: {}]   ;;  %s993_s2 = inlined_call_operand.<no memory space> [shape: f32[1], index: 2, kind: input, shape index: {}]   ;;  %s994_s3 = inlined_call_operand.hbm [shape: f32[16,2,17], index: 3, kind: output, shape index: {}]  }
   0x1   :  { %8 = sst [smem:[#allocation2]] %s993_s2 }
   0x2   :  { %9 = vsyncpa [#allocation4], 0 }
   0x3   :  { %11 = vsyncpa [#allocation4 + $0x1], 0  ;;  %s844_s14 = smov 0   ;;  %s846_s15 = smov 0  }
   0x4   :  { %s848_s16 = smov 0   ;;  %s850_s17 = smov 0  }
   0x5 LB: > { %s865_s2 = sadd.s32 4294967295, %s812_s17   ;;  %s598_s18 = sadd.s32 4294967294, %s812_s17   ;;  %s812_s17 = sphi %s850_s17, %s1000_s17   ;;  %s808_s16 = sphi %s848_s16, %s999_s16   ;;  %s804_s15 = sphi %s846_s15, %s998_s15   ;;  %s800_s14 = sphi %s844_s14, %s997_s14  }
   0x6   : > { %s869_s19 = sadd.s32 1, %s812_s17   ;;  %s92_s20 = sadd.s32 1, %s808_s16 }
   0x7   : > { %s89_s21 = ssub.s32 %s812_s17, %s869_s19  ;;  %p102_p0 = scmp.ne.s32.totalorder %s808_s16, %s804_s15 }
   0x8   : > { %p90_p1 = scmp.eq.s32.totalorder %s89_s21, 0  ;;  %p103_p2 = scmp.eq.s32.totalorder %s865_s2, 3 }
   0x9   : > { %p108_p3 = scmp.ne.s32.totalorder %s804_s15, %s800_s14  ;;  %p109_p4 = scmp.eq.s32.totalorder %s598_s18, 3 }
   0xa   : > { %s880_s22 = scalar_select %p90_p1, %s808_s16, %s92_s20  }
   0xb   : > { %p882_p5 = por %p103_p2, %p102_p0  ;;  %p886_p6 = por %p109_p4, %p108_p3 }
   0xc   : > { %p601_p7 = scmp.ge.s32.totalorder %s812_s17, 1  ;;  %p143_p8 = scmp.lt.s32.totalorder %s812_s17, 5 }
   0xe   : > { %p144_p9 = pnand %p601_p7, %p143_p8 }
   0xf   : > { %s603_s25 = sshll.u32 (!%p144_p9), %s865_s2, 2  ;;  %v814_v0 = vmov (!%p144_p9), 0.0|0.0   ;;  %vm815_vm0 = vmmov (!%p144_p9), 0   ;;  %v816_v1 = vmov (!%p144_p9), 0.0   ;;  %v177_v18 = vld [vmem:[%s992_s1] sm:$0xf] (!%p144_p9) }
  0x10   : > { %147 = sbr.rel (%p144_p9) target bundleno = 397 (0x18d), region = 32  ;;  %681 = vmatprep.subr.bf16.mxu0 (!%p144_p9), %v814_v0  ;;  %p169_p10 = scmp.lt.s32.totalorder (!%p144_p9), %s603_s25, 15  ;;  %687 = vmatprep.subr.bf16.mxu1 (!%p144_p9), %v814_v0  ;;  %vm194_vm1 = vcmask (!%p144_p9), 261120   ;;  %vm478_vm2 = vcmask (!%p144_p9), 130048   ;;  %vm503_vm3 = vcmask (!%p144_p9), 7168   ;;  %vm517_vm4 = vcmask (!%p144_p9), 132096  }
  0x11   : > { %645 = vmatprep.mubr.msk.f32.mxu0 (!%p144_p9), %vm815_vm0, %v816_v1  ;;  %656 = vmatprep.mubr.msk.f32.mxu1 (!%p144_p9), %vm815_vm0, %v816_v1  ;;  %s817_s5 = smov (!%p144_p9), 1   ;;  %s176_s6 = sld [smem:[#allocation2]] (!%p144_p9) }
  0x12   : > { %s165_s7 = sand.u32 (!%p144_p9), 1, %s804_s15   ;;  %s616_s10 = sshll.u32 (!%p144_p9), %s865_s2, 7 }
  0x13   : > { %s602_s8 = sshll.u32 (!%p144_p9), %s165_s7, 3  ;;  %s943_s18 = scalar_lea.hbm (!%p144_p9), %s994_s3, %s616_s10 }
  0x14   : > { %s167_s9 = scalar_lea.vmem (!%p144_p9), [#allocation3], %s602_s8  ;;  %s950_s2 = scalar_lea.sflag (!%p144_p9), [#allocation4], %s165_s7 }
  0x15   : > { %s536_s11 = sshll.u32 (!%p144_p9), %s167_s9, 4  ;;  %s818_s21 = smov (!%p144_p9), [#allocation3]   ;;  %s945_s11 = int_to_ptr.vmem [resolvable:$true] %s536_s11 }
  0x16   : > { %s750_s20 = scalar_lea.vmem (!%p144_p9), %s945_s11, 128 }
  0x17   : > { %s1002_s25 = smov (!%p169_p10, %s603_s25), 15  ;;  %v512_v41 = vstv %s176_s6  ;;  %p751_p11 = scmp.ne.s32.totalorder %s945_s11, %s750_s20 }
  0x18   : > { %s615_s26 = sshll.u32 %s1002_s25, 5  ;;  %s754_s25 = sshll.u32 %s818_s21, 4  ;;  %s755_s25 = int_to_ptr.vmem [resolvable:$false] %s754_s25 }
  0x19   : > { %s898_s29 = scalar_lea.vmem %s991_s0, %s615_s26  ;;  %p752_p12 = pnand %p751_p11, %p882_p5 }
  0x1a   : > { %v178_v2 = vld [vmem:[%s898_s29] sm:$0xff]  ;;  %v179_v3 = vld [vmem:[%s898_s29 + $0x8] sm:$0xff]  ;;  %v180_v7 = vld [vmem:[%s898_s29 + $0x10] sm:$0xff]  ;;  %s756_s26 = scalar_lea.vmem %s755_s25, 256  ;;  %p757_p0 = scmp.lt.s32.totalorder %s945_s11, %s755_s25 }
  0x1b   : > { %v182_v4 = vld [vmem:[%s898_s29 + $0x20] sm:$0xff]  ;;  %v682_v5 = vpack.c.bf16 %v179_v3, %v178_v2  ;;  %v183_v6 = vld [vmem:[%s898_s29 + $0x28] sm:$0xff]  ;;  %v181_v8 = vld [vmem:[%s898_s29 + $0x18] sm:$0xff]  ;;  %p753_p13 = pneg %p752_p12  ;;  %p758_p1 = scmp.lt.s32.totalorder %s756_s26, %s750_s20 }
  0x1c   : > { %v688_v9 = vpack.c.bf16 %v183_v6, %v182_v4  ;;  %v184_v10 = vld [vmem:[%s898_s29 + $0x30] sm:$0xff]  ;;  %v185_v11 = vld [vmem:[%s898_s29 + $0x38] sm:$0xff]  ;;  %v685_v12 = vpack.c.bf16 %v181_v8, %v180_v7  ;;  %v186_v14 = vld [vmem:[%s898_s29 + $0x40] sm:$0xff] }
  0x1d   : > { %683 = vmatpush3.bf16.msra.mxu0 %v682_v5  ;;  %v691_v13 = vpack.c.bf16 %v185_v11, %v184_v10  ;;  %v187_v15 = vld [vmem:[%s898_s29 + $0x48] sm:$0xff]  ;;  %v190_v16 = vld [vmem:[%s898_s29 + $0x60] sm:$0xff]  ;;  %v188_v21 = vld [vmem:[%s898_s29 + $0x50] sm:$0xff]  ;;  %p759_p2 = por %p758_p1, %p757_p0 }
  0x1e   : > { %684 = vmatprep.subr.bf16.mxu0 %v814_v0  ;;  %689 = vmatpush3.bf16.msra.mxu1 %v688_v9  ;;  %v191_v17 = vld [vmem:[%s898_s29 + $0x68] sm:$0xff]  ;;  %v694_v19 = vpack.c.bf16 %v187_v15, %v186_v14  ;;  %v189_v22 = vld [vmem:[%s898_s29 + $0x58] sm:$0xff]  ;;  %v192_v23 = vld [vmem:[%s898_s29 + $0x70] sm:$0xff] }
  0x1f   : > { %690 = vmatprep.subr.bf16.mxu1 %v814_v0  ;;  %v700_v20 = vpack.c.bf16 %v191_v17, %v190_v16  ;;  %v193_v24 = vld [vmem:[%s898_s29 + $0x78] sm:$0xff]  ;;  %v697_v25 = vpack.c.bf16 %v189_v22, %v188_v21  ;;  %p760_p3 = pnand %p759_p2, %p753_p13 }
  0x20   : > { %v703_v26 = vpack.c.bf16 %v193_v24, %v192_v23 }
  0x21   : > { %686 = vmatpush3.bf16.msra.mxu0 %v685_v12 }
  0x22   : > { %692 = vmatpush3.bf16.msra.mxu1 %v691_v13  ;;  %693 = vmatprep.subr.bf16.mxu0 %v814_v0 }
  0x23   : > { %699 = vmatprep.subr.bf16.mxu1 %v814_v0 }
  0x24   : > { %646 = vmatmul.mubr.msk.f32.vlgmr.msra.gmra.mrb[0].mxu0 %vm194_vm1, %v177_v18 }
  0x25   : > { %695 = vmatpush3.bf16.msra.mxu0 %v694_v19  ;;  %657 = vmatmul.mubr.msk.f32.vlgmr.msra.gmra.mrb[0].mxu1 %vm194_vm1, %v177_v18 }
  0x26   : > { %696 = vmatprep.subr.bf16.mxu0 %v814_v0  ;;  %701 = vmatpush3.bf16.msra.mxu1 %v700_v20 }
  0x27   : > { %667 = vmatprep.mubr.msk.f32.mxu0 %vm815_vm0, %v816_v1  ;;  %702 = vmatprep.subr.bf16.mxu1 %v814_v0 }
  0x28   : > { %678 = vmatprep.mubr.msk.f32.mxu1 %vm815_vm0, %v816_v1 }
  0x29   : > { %698 = vmatpush3.bf16.msra.mxu0 %v697_v25 }
  0x2a   : > { %704 = vmatpush3.bf16.msra.mxu1 %v703_v26 }
  0x2c   : > { %668 = vmatmul.mubr.msk.f32.vlgmr.msra.gmra.mrb[2].mxu0 %vm194_vm1, %v177_v18 }
  0x2d   : > { %679 = vmatmul.mubr.msk.f32.vlgmr.msra.gmra.mrb[2].mxu1 %vm194_vm1, %v177_v18 }
  0xf7   : > { %v264_v27 = vpop.f32.mrb[0].mxu0 }
  0xf8   : > { %v647_v28 = vpop.f32.mrb[1].mxu0  ;;  %v487_v29 = vrot.slane %v264_v27, 2  ;;  %v334_v30 = vpop.f32.mrb[0].mxu1  ;;  %v479_v40 = vsel %vm478_vm2, %v264_v27, 0.0 }
  0xf9   : > { %v658_v31 = vpop.f32.mrb[1].mxu1  ;;  %v488_v32 = vrot.slane %v334_v30, 2  ;;  %v480_v46 = vsel %vm478_vm2, %v334_v30, 0.0 }
  0xfa   : > { %491 = vrot.lane.b32.xlu0 %v487_v29, %s817_s5 }
  0xfe   : > { %493 = vrot.lane.b32.xlu0 %v488_v32, %s817_s5 }
  0xff   : > { %v404_v33 = vpop.f32.mrb[2].mxu0 }
 0x100   : > { %v669_v34 = vpop.f32.mrb[3].mxu0  ;;  %v474_v35 = vpop.f32.mrb[2].mxu1  ;;  %v489_v36 = vrot.slane %v404_v33, 2  ;;  %v481_v51 = vsel %vm478_vm2, %v404_v33, 0.0 }
 0x101   : > { %v680_v37 = vpop.f32.mrb[3].mxu1  ;;  %v490_v38 = vrot.slane %v474_v35, 2  ;;  %v482_v56 = vsel %vm478_vm2, %v474_v35, 0.0 }
 0x102   : > { %495 = vrot.lane.b32.xlu1 %v489_v36, %s817_s5 }
 0x106   : > { %497 = vrot.lane.b32.xlu1 %v490_v38, %s817_s5 }
 0x16c   : > { %v492_v39 = vpop.permute.xlu0 %491 }
 0x16d   : > { %v504_v42 = vsel %vm503_vm3, 0.0, %v492_v39 }
 0x16e   : > { %v508_v43 = vadd.f32 %v504_v42, %v479_v40 }
 0x170   : > { %v513_v44 = vadd.f32 %v512_v41, %v508_v43  ;;  %v494_v45 = vpop.permute.xlu0 %493 }
 0x171   : > { %v505_v47 = vsel %vm503_vm3, 0.0, %v494_v45 }
 0x172   : > { %518 = vst.msk [vmem:[%s167_s9] sm:$0x3] %vm517_vm4, %v513_v44  ;;  %v509_v48 = vadd.f32 %v505_v47, %v480_v46 }
 0x174   : > { %v514_v49 = vadd.f32 %v512_v41, %v509_v48  ;;  %v496_v50 = vpop.permute.xlu1 %495 }
 0x175   : > { %v506_v52 = vsel %vm503_vm3, 0.0, %v496_v50 }
 0x176   : > { %519 = vst.msk [vmem:[%s167_s9 + $0x2] sm:$0x3] %vm517_vm4, %v514_v49  ;;  %v510_v53 = vadd.f32 %v506_v52, %v481_v51 }
 0x178   : > { %v515_v54 = vadd.f32 %v512_v41, %v510_v53  ;;  %v498_v55 = vpop.permute.xlu1 %497 }
 0x179   : > { %v507_v57 = vsel %vm503_vm3, 0.0, %v498_v55 }
 0x17a   : > { %520 = vst.msk [vmem:[%s167_s9 + $0x4] sm:$0x3] %vm517_vm4, %v515_v54  ;;  %v511_v58 = vadd.f32 %v507_v57, %v482_v56 }
 0x17c   : > { %v516_v59 = vadd.f32 %v512_v41, %v511_v58 }
 0x17e   : > { %521 = vst.msk [vmem:[%s167_s9 + $0x6] sm:$0x3] %vm517_vm4, %v516_v59 }
 0x17f   : > { %763 = shalt.err (!%p760_p3)
}
 0x180   : > { %s764_s27 = scalar_lea.hbm %s943_s18, 128  ;;  %s768_s30 = scalar_lea.hbm %s994_s3, 512 }
 0x181   : > { %p765_p4 = scmp.ne.s32.totalorder %s943_s18, %s764_s27  ;;  %p769_p9 = scmp.lt.u32.totalorder %s943_s18, %s994_s3 }
 0x182   : > { %p770_p10 = scmp.lt.u32.totalorder %s768_s30, %s764_s27  ;;  %p772_p12 = scmp.lt.u32.totalorder %s764_s27, %s943_s18 }
 0x183   : > { %p766_p7 = pnand %p765_p4, %p882_p5 }
 0x184   : > { %p771_p11 = por %p770_p10, %p769_p9 }
 0x185   : > { %p767_p8 = pneg %p766_p7 }
 0x186   : > { %p773_p13 = por %p772_p12, %p771_p11 }
 0x188   : > { %p774_p0 = pnand %p773_p13, %p767_p8 }
 0x18a   : > { %777 = shalt.err (!%p774_p0)
}
 0x18b   : > { %s819_s6 = smov 32   ;;  %s820_s7 = smov 2  }
 0x18c   : > { %705 = dma.vmem_to_hbm [thread:$0]  (%p882_p5), %s945_s11, 128, %s943_s18, %s950_s2, %s819_s6, %s819_s6, %s820_s7  }
 0x18d PF: > { %p711_p1 = scmp.ge.s32.totalorder %s812_s17, 2  ;;  %s551_s8 = sand.u32 1, %s800_s14  }
 0x18e   : > { %s552_s9 = scalar_lea.sflag [#allocation4], %s551_s8 }
 0x18f   : > { %p708_p2 = pnand %p711_p1, %p886_p6 }
 0x191   : > { %795 = dma.done.wait (!%p708_p2), %s552_s9, 128  }
 0x192   : > { %797 = vsyncadd (!%p708_p2), %s552_s9, 4294967168  ;;  %p14_p3 = scmp.ge.s32.totalorder %s869_s19, 6   ;;  %s997_s14 = smov %s804_s15 }
 0x193   : > { %s998_s15 = smov %s808_s16  ;;  %s999_s16 = smov %s880_s22 }
 0x194   : > { %s1000_s17 = smov %s869_s19  ;;  %16 = sbr.rel (!%p14_p3) target bundleno = 5 (0x5), region = 67 }
 0x19b   :  { %557 = vsyncpa [#allocation4], 1 }
 0x19c   :  { %559 = vsyncpa [#allocation4 + $0x1], 1 }

</bundles_post_ra>
